<compile_context>
chip_gen: v7x
topology: tpu7x:2x2x1
jax: 0.10.0
libtpu: 0.0.40
codegen_flags: <defaults>
</compile_context>

<pallas_src>
import functools

import jax
import jax.numpy as jnp
from jax.experimental import pallas as pl
from jax.experimental.pallas import tpu as pltpu


def _round_up(x, m):
    return (x + m - 1) // m * m


# ----------------------------------------------------------------------------
# Pallas kernel: fused conv3x3+ReLU -> conv3x3+tanh on a flattened padded image
# ----------------------------------------------------------------------------
def _fused_generator_kernel(x_ref, w1_ref, b1_ref, w2_ref, b2_ref, mask_ref,
                            o_ref, *, wp, f_h0, l_h, l_out):
    """Per batch element.

    x_ref    : [cin_p, F]        bf16  zero-padded, flattened (row-major) image
    w1_ref   : [9, ngf, cin_p]   bf16  conv1 taps (kh*3+kw order)
    b1_ref   : [ngf, 1]          f32
    w2_ref   : [9, cout, ngf]    bf16  conv2 taps
    b2_ref   : [cout, 1]         f32
    mask_ref : [1, l_h]          f32   1.0 on the valid HxW region of h, else 0
    o_ref    : [cout, l_out]     f32   lane-dense output (spatial on lanes)
    """
    x = x_ref[...]                                            # [cin_p, F] bf16
    ngf = w1_ref.shape[1]
    c_out = w2_ref.shape[1]

    # ---- conv1 (3x3, 'same' zero pad) as 9 shifted matmuls, f32 accumulate --
    acc1 = jnp.zeros((ngf, l_h), jnp.float32)
    k = 0
    for dh in (-1, 0, 1):
        for dw in (-1, 0, 1):
            s = f_h0 + dh * wp + dw                           # static offset
            acc1 = acc1 + jnp.dot(w1_ref[k], x[:, s:s + l_h],
                                  preferred_element_type=jnp.float32)
            k += 1
    # bias + ReLU; mask zeroes everything outside the true HxW region so that
    # conv2 sees exact zero padding of the intermediate feature map.
    hfeat = jnp.maximum(acc1 + b1_ref[...], 0.0) * mask_ref[...]
    hfeat = hfeat.astype(jnp.bfloat16)

    # ---- conv2 (3x3, 'same' zero pad) + bias + tanh -------------------------
    acc2 = jnp.zeros((c_out, l_out), jnp.float32)
    k = 0
    for dh in (-1, 0, 1):
        for dw in (-1, 0, 1):
            s = (wp + 1) + dh * wp + dw                       # static offset
            acc2 = acc2 + jnp.dot(w2_ref[k], hfeat[:, s:s + l_out],
                                  preferred_element_type=jnp.float32)
            k += 1
    o_ref[...] = jnp.tanh(acc2 + b2_ref[...]).astype(o_ref.dtype)


def fused_generator(x_nchw, w1, b1, w2, b2):
    """Fused 2-layer generator.

    x_nchw : [N, Cin, H, W] f32
    w1     : [ngf, Cin, 3, 3], b1: [ngf]
    w2     : [Cout, ngf, 3, 3], b2: [Cout]
    returns [N, Cout, H, W] f32  ==  tanh(conv3x3(relu(conv3x3(x))))
    """
    n, c_in, h, w = x_nchw.shape
    ngf = w1.shape[0]
    c_out = w2.shape[0]

    cin_p = _round_up(max(c_in, 8), 8)          # pad channels for clean tiling
    hp, wp = h + 4, w + 4                       # spatial pad of 2 (two fused 3x3)
    flat_len = hp * wp
    guard_l = 2                                 # guard zeros so tap slices stay in-bounds
    f_total = _round_up(flat_len + 2 * guard_l, 128)   # lane-dense flat length
    guard_r = f_total - flat_len - guard_l
    l_h = (h + 2) * wp + 2                      # flat extent of intermediate h
    l_out = h * wp                              # flat extent of output rows
    f_h0 = guard_l + wp - 1                     # flat start of the h block

    # ---- host-side layout prep (no 9x im2col, no transposes) ---------------
    xp = jnp.pad(x_nchw, ((0, 0), (0, cin_p - c_in), (2, 2), (2, 2)))
    xf = xp.reshape(n, cin_p, flat_len)
    xf = jnp.pad(xf, ((0, 0), (0, 0), (guard_l, guard_r))).astype(jnp.bfloat16)

    w1t = jnp.transpose(w1, (2, 3, 0, 1)).reshape(9, ngf, c_in)
    w1t = jnp.pad(w1t, ((0, 0), (0, 0), (0, cin_p - c_in))).astype(jnp.bfloat16)
    w2t = jnp.transpose(w2, (2, 3, 0, 1)).reshape(9, c_out, ngf).astype(jnp.bfloat16)
    b1c = b1.reshape(ngf, 1).astype(jnp.float32)
    b2c = b2.reshape(c_out, 1).astype(jnp.float32)

    # validity mask for the intermediate feature map (1.0 on the true HxW area)
    m_idx = jnp.arange(l_h, dtype=jnp.int32) + (wp - 1)   # padded flat position
    row = m_idx // wp
    col = m_idx % wp
    valid = (row >= 2) & (row < h + 2) & (col >= 2) & (col < w + 2)
    mask = valid.astype(jnp.float32).reshape(1, l_h)

    kernel = functools.partial(_fused_generator_kernel,
                               wp=wp, f_h0=f_h0, l_h=l_h, l_out=l_out)

    out_flat = pl.pallas_call(
        kernel,
        out_shape=jax.ShapeDtypeStruct((n, c_out, l_out), jnp.float32),
        grid_spec=pltpu.PrefetchScalarGridSpec(
            num_scalar_prefetch=0,
            grid=(n,),
            in_specs=[
                pl.BlockSpec((None, cin_p, f_total), lambda i: (i, 0, 0)),
                pl.BlockSpec((9, ngf, cin_p), lambda i: (0, 0, 0)),
                pl.BlockSpec((ngf, 1), lambda i: (0, 0)),
                pl.BlockSpec((9, c_out, ngf), lambda i: (0, 0, 0)),
                pl.BlockSpec((c_out, 1), lambda i: (0, 0)),
                pl.BlockSpec((1, l_h), lambda i: (0, 0)),
            ],
            out_specs=pl.BlockSpec((None, c_out, l_out), lambda i: (i, 0, 0)),
        ),
        compiler_params=pltpu.CompilerParams(
            dimension_semantics=("parallel",),      # shard batch over v7x's 2 TCs
            vmem_limit_bytes=32 * 1024 * 1024,      # safe on v5e/v6e/v7x budgets
        ),
    )(xf, w1t, b1c, w2t, b2c, mask)

    # Output is already NCHW with spatial flattened over the padded width;
    # just drop the width pad columns.  No transpose needed.
    return out_flat.reshape(n, c_out, h, wp)[:, :, :, 2:2 + w]


# ----------------------------------------------------------------------------
# preprocess_input semantics (exactly as in Pix2PixModel)
# ----------------------------------------------------------------------------
def get_edges(t):
    """t: [N, 1, H, W] int -> float edge map, SPADE get_edges semantics."""
    e = jnp.zeros(t.shape, dtype=bool)
    dw = t[:, :, :, 1:] != t[:, :, :, :-1]
    dh = t[:, :, 1:, :] != t[:, :, :-1, :]
    e = e.at[:, :, :, 1:].set(e[:, :, :, 1:] | dw)
    e = e.at[:, :, :, :-1].set(e[:, :, :, :-1] | dw)
    e = e.at[:, :, 1:, :].set(e[:, :, 1:, :] | dh)
    e = e.at[:, :, :-1, :].set(e[:, :, :-1, :] | dh)
    return e.astype(jnp.float32)


def preprocess_input(label, instance, label_nc,
                     contain_dontcare_label=False, no_instance=False):
    """label, instance: [N, 1, H, W] int32 -> input_semantics [N, nc(+1), H, W]."""
    nc = label_nc + 1 if contain_dontcare_label else label_nc
    lab = label[:, 0].astype(jnp.int32)                                # [N, H, W]
    classes = jnp.arange(nc, dtype=jnp.int32).reshape(1, nc, 1, 1)
    # one-hot scatter along channel dim, directly in NCHW (no transpose)
    input_semantics = (lab[:, None, :, :] == classes).astype(jnp.float32)
    if not no_instance:
        input_semantics = jnp.concatenate(
            [input_semantics, get_edges(instance)], axis=1)
    return input_semantics


@functools.partial(jax.jit,
                   static_argnames=("label_nc", "contain_dontcare_label",
                                    "no_instance"))
def pix2pix_forward(w1, b1, w2, b2, label, instance, *, label_nc,
                    contain_dontcare_label, no_instance):
    input_semantics = preprocess_input(label, instance, label_nc,
                                       contain_dontcare_label, no_instance)
    return fused_generator(input_semantics, w1, b1, w2, b2)


# ----------------------------------------------------------------------------
# Pix2Pix model (inference forward only)
# ----------------------------------------------------------------------------
class Pix2PixPallas:
    def __init__(self, label_nc=4, ngf=16, output_nc=3,
                 contain_dontcare_label=False, no_instance=False,
                 key=jax.random.PRNGKey(42)):
        self.label_nc = label_nc
        self.contain_dontcare_label = contain_dontcare_label
        self.no_instance = no_instance
        nc = label_nc + (1 if contain_dontcare_label else 0)
        c_in = nc + (0 if no_instance else 1)
        k1, k2 = jax.random.split(key)
        # deterministic normal(0, 0.02) init (SPADE-style), zero bias
        self.w1 = 0.02 * jax.random.normal(k1, (ngf, c_in, 3, 3), jnp.float32)
        self.b1 = jnp.zeros((ngf,), jnp.float32)
        self.w2 = 0.02 * jax.random.normal(k2, (output_nc, ngf, 3, 3), jnp.float32)
        self.b2 = jnp.zeros((output_nc,), jnp.float32)

    def generate_fake(self, input_semantics):
        fake_image = fused_generator(input_semantics, self.w1, self.b1,
                                     self.w2, self.b2)
        return fake_image, None   # (fake_image, KLD_loss)

    def forward(self, data, mode="inference"):
        return pix2pix_forward(
            self.w1, self.b1, self.w2, self.b2,
            data["label"], data["instance"],
            label_nc=self.label_nc,
            contain_dontcare_label=self.contain_dontcare_label,
            no_instance=self.no_instance)


# ----------------------------------------------------------------------------
if __name__ == "__main__":
    key = jax.random.PRNGKey(0)
    k_lab, k_inst, k_img = jax.random.split(key, 3)

    N, H, W = 2, 16, 16
    label_nc = 4
    data = {
        "label": jax.random.randint(k_lab, (N, 1, H, W), 0, label_nc, jnp.int32),
        "instance": jax.random.randint(k_inst, (N, 1, H, W), 0, 3, jnp.int32),
        "image": jax.random.normal(k_img, (N, 3, H, W), jnp.float32),
    }

    model = Pix2PixPallas(label_nc=label_nc, ngf=16, output_nc=3)
    fake = model.forward(data, mode="inference")
    fake = jax.block_until_ready(fake)

    assert fake.shape == (N, 3, H, W), fake.shape
    assert fake.dtype == jnp.float32
    assert bool(jnp.all(jnp.isfinite(fake)))
    print("KERNEL_OK")
</pallas_src>

<mosaic_0001>
module attributes {stable_mosaic.version = 11 : i64} {
  func.func @_fused_generator_kernel(%arg0: i32, %arg1: memref<1x8x512xbf16, #tpu.memory_space<vmem>>, %arg2: memref<9x16x8xbf16, #tpu.memory_space<vmem>>, %arg3: memref<16x1xf32, #tpu.memory_space<vmem>>, %arg4: memref<9x3x16xbf16, #tpu.memory_space<vmem>>, %arg5: memref<3x1xf32, #tpu.memory_space<vmem>>, %arg6: memref<1x362xf32, #tpu.memory_space<vmem>>, %arg7: memref<1x3x320xf32, #tpu.memory_space<vmem>>) attributes {dimension_semantics = [#tpu.dimension_semantics<parallel>], iteration_bounds = array<i64: 2>, scalar_prefetch = 0 : i64, scratch_operands = 0 : i64, tpu.core_type = #tpu.core_type<tc>, window_params = [{transform_indices = @transform_0, window_bounds = array<i64: 1, 8, 512>}, {pipeline_mode = #tpu.pipeline_mode<synchronous>, transform_indices = @transform_1, window_bounds = array<i64: 9, 16, 8>}, {pipeline_mode = #tpu.pipeline_mode<synchronous>, transform_indices = @transform_2, window_bounds = array<i64: 16, 1>}, {pipeline_mode = #tpu.pipeline_mode<synchronous>, transform_indices = @transform_3, window_bounds = array<i64: 9, 3, 16>}, {pipeline_mode = #tpu.pipeline_mode<synchronous>, transform_indices = @transform_4, window_bounds = array<i64: 3, 1>}, {pipeline_mode = #tpu.pipeline_mode<synchronous>, transform_indices = @transform_5, window_bounds = array<i64: 1, 362>}, {transform_indices = @transform_6, window_bounds = array<i64: 1, 3, 320>}]} {
    %c0 = arith.constant 0 : index
    %c0_0 = arith.constant 0 : index
    %c0_1 = arith.constant 0 : index
    %0 = vector.load %arg1[%c0, %c0_0, %c0_1] : memref<1x8x512xbf16, #tpu.memory_space<vmem>>, vector<1x8x512xbf16>
    %1 = vector.shape_cast %0 : vector<1x8x512xbf16> to vector<8x512xbf16>
    %cst = arith.constant 0.000000e+00 : f32
    %2 = vector.broadcast %cst : f32 to vector<16x362xf32>
    %c0_2 = arith.constant 0 : index
    %c0_3 = arith.constant 0 : index
    %c0_4 = arith.constant 0 : index
    %3 = vector.load %arg2[%c0_2, %c0_3, %c0_4] : memref<9x16x8xbf16, #tpu.memory_space<vmem>>, vector<1x16x8xbf16>
    %4 = vector.shape_cast %3 : vector<1x16x8xbf16> to vector<16x8xbf16>
    %5 = vector.extract_strided_slice %1 {offsets = [0, 0], sizes = [8, 362], strides = [1, 1]} : vector<8x512xbf16> to vector<8x362xbf16>
    %cst_5 = arith.constant dense<0.000000e+00> : vector<16x362xf32>
    %6 = tpu.matmul %4, %5, %cst_5 {dimension_numbers = #tpu.dot_dimension_numbers<[1], [0], [0], [1], [0, 0, 1, 1], [], []>} : vector<16x8xbf16>, vector<8x362xbf16>, vector<16x362xf32> -> vector<16x362xf32>
    %7 = arith.addf %2, %6 : vector<16x362xf32>
    %c1 = arith.constant 1 : index
    %c0_6 = arith.constant 0 : index
    %c0_7 = arith.constant 0 : index
    %8 = vector.load %arg2[%c1, %c0_6, %c0_7] : memref<9x16x8xbf16, #tpu.memory_space<vmem>>, vector<1x16x8xbf16>
    %9 = vector.shape_cast %8 : vector<1x16x8xbf16> to vector<16x8xbf16>
    %10 = vector.extract_strided_slice %1 {offsets = [0, 1], sizes = [8, 362], strides = [1, 1]} : vector<8x512xbf16> to vector<8x362xbf16>
    %cst_8 = arith.constant dense<0.000000e+00> : vector<16x362xf32>
    %11 = tpu.matmul %9, %10, %cst_8 {dimension_numbers = #tpu.dot_dimension_numbers<[1], [0], [0], [1], [0, 0, 1, 1], [], []>} : vector<16x8xbf16>, vector<8x362xbf16>, vector<16x362xf32> -> vector<16x362xf32>
    %12 = arith.addf %7, %11 : vector<16x362xf32>
    %c2 = arith.constant 2 : index
    %c0_9 = arith.constant 0 : index
    %c0_10 = arith.constant 0 : index
    %13 = vector.load %arg2[%c2, %c0_9, %c0_10] : memref<9x16x8xbf16, #tpu.memory_space<vmem>>, vector<1x16x8xbf16>
    %14 = vector.shape_cast %13 : vector<1x16x8xbf16> to vector<16x8xbf16>
    %15 = vector.extract_strided_slice %1 {offsets = [0, 2], sizes = [8, 362], strides = [1, 1]} : vector<8x512xbf16> to vector<8x362xbf16>
    %cst_11 = arith.constant dense<0.000000e+00> : vector<16x362xf32>
    %16 = tpu.matmul %14, %15, %cst_11 {dimension_numbers = #tpu.dot_dimension_numbers<[1], [0], [0], [1], [0, 0, 1, 1], [], []>} : vector<16x8xbf16>, vector<8x362xbf16>, vector<16x362xf32> -> vector<16x362xf32>
    %17 = arith.addf %12, %16 : vector<16x362xf32>
    %c3 = arith.constant 3 : index
    %c0_12 = arith.constant 0 : index
    %c0_13 = arith.constant 0 : index
    %18 = vector.load %arg2[%c3, %c0_12, %c0_13] : memref<9x16x8xbf16, #tpu.memory_space<vmem>>, vector<1x16x8xbf16>
    %19 = vector.shape_cast %18 : vector<1x16x8xbf16> to vector<16x8xbf16>
    %20 = vector.extract_strided_slice %1 {offsets = [0, 20], sizes = [8, 362], strides = [1, 1]} : vector<8x512xbf16> to vector<8x362xbf16>
    %cst_14 = arith.constant dense<0.000000e+00> : vector<16x362xf32>
    %21 = tpu.matmul %19, %20, %cst_14 {dimension_numbers = #tpu.dot_dimension_numbers<[1], [0], [0], [1], [0, 0, 1, 1], [], []>} : vector<16x8xbf16>, vector<8x362xbf16>, vector<16x362xf32> -> vector<16x362xf32>
    %22 = arith.addf %17, %21 : vector<16x362xf32>
    %c4 = arith.constant 4 : index
    %c0_15 = arith.constant 0 : index
    %c0_16 = arith.constant 0 : index
    %23 = vector.load %arg2[%c4, %c0_15, %c0_16] : memref<9x16x8xbf16, #tpu.memory_space<vmem>>, vector<1x16x8xbf16>
    %24 = vector.shape_cast %23 : vector<1x16x8xbf16> to vector<16x8xbf16>
    %25 = vector.extract_strided_slice %1 {offsets = [0, 21], sizes = [8, 362], strides = [1, 1]} : vector<8x512xbf16> to vector<8x362xbf16>
    %cst_17 = arith.constant dense<0.000000e+00> : vector<16x362xf32>
    %26 = tpu.matmul %24, %25, %cst_17 {dimension_numbers = #tpu.dot_dimension_numbers<[1], [0], [0], [1], [0, 0, 1, 1], [], []>} : vector<16x8xbf16>, vector<8x362xbf16>, vector<16x362xf32> -> vector<16x362xf32>
    %27 = arith.addf %22, %26 : vector<16x362xf32>
    %c5 = arith.constant 5 : index
    %c0_18 = arith.constant 0 : index
    %c0_19 = arith.constant 0 : index
    %28 = vector.load %arg2[%c5, %c0_18, %c0_19] : memref<9x16x8xbf16, #tpu.memory_space<vmem>>, vector<1x16x8xbf16>
    %29 = vector.shape_cast %28 : vector<1x16x8xbf16> to vector<16x8xbf16>
    %30 = vector.extract_strided_slice %1 {offsets = [0, 22], sizes = [8, 362], strides = [1, 1]} : vector<8x512xbf16> to vector<8x362xbf16>
    %cst_20 = arith.constant dense<0.000000e+00> : vector<16x362xf32>
    %31 = tpu.matmul %29, %30, %cst_20 {dimension_numbers = #tpu.dot_dimension_numbers<[1], [0], [0], [1], [0, 0, 1, 1], [], []>} : vector<16x8xbf16>, vector<8x362xbf16>, vector<16x362xf32> -> vector<16x362xf32>
    %32 = arith.addf %27, %31 : vector<16x362xf32>
    %c6 = arith.constant 6 : index
    %c0_21 = arith.constant 0 : index
    %c0_22 = arith.constant 0 : index
    %33 = vector.load %arg2[%c6, %c0_21, %c0_22] : memref<9x16x8xbf16, #tpu.memory_space<vmem>>, vector<1x16x8xbf16>
    %34 = vector.shape_cast %33 : vector<1x16x8xbf16> to vector<16x8xbf16>
    %35 = vector.extract_strided_slice %1 {offsets = [0, 40], sizes = [8, 362], strides = [1, 1]} : vector<8x512xbf16> to vector<8x362xbf16>
    %cst_23 = arith.constant dense<0.000000e+00> : vector<16x362xf32>
    %36 = tpu.matmul %34, %35, %cst_23 {dimension_numbers = #tpu.dot_dimension_numbers<[1], [0], [0], [1], [0, 0, 1, 1], [], []>} : vector<16x8xbf16>, vector<8x362xbf16>, vector<16x362xf32> -> vector<16x362xf32>
    %37 = arith.addf %32, %36 : vector<16x362xf32>
    %c7 = arith.constant 7 : index
    %c0_24 = arith.constant 0 : index
    %c0_25 = arith.constant 0 : index
    %38 = vector.load %arg2[%c7, %c0_24, %c0_25] : memref<9x16x8xbf16, #tpu.memory_space<vmem>>, vector<1x16x8xbf16>
    %39 = vector.shape_cast %38 : vector<1x16x8xbf16> to vector<16x8xbf16>
    %40 = vector.extract_strided_slice %1 {offsets = [0, 41], sizes = [8, 362], strides = [1, 1]} : vector<8x512xbf16> to vector<8x362xbf16>
    %cst_26 = arith.constant dense<0.000000e+00> : vector<16x362xf32>
    %41 = tpu.matmul %39, %40, %cst_26 {dimension_numbers = #tpu.dot_dimension_numbers<[1], [0], [0], [1], [0, 0, 1, 1], [], []>} : vector<16x8xbf16>, vector<8x362xbf16>, vector<16x362xf32> -> vector<16x362xf32>
    %42 = arith.addf %37, %41 : vector<16x362xf32>
    %c8 = arith.constant 8 : index
    %c0_27 = arith.constant 0 : index
    %c0_28 = arith.constant 0 : index
    %43 = vector.load %arg2[%c8, %c0_27, %c0_28] : memref<9x16x8xbf16, #tpu.memory_space<vmem>>, vector<1x16x8xbf16>
    %44 = vector.shape_cast %43 : vector<1x16x8xbf16> to vector<16x8xbf16>
    %45 = vector.extract_strided_slice %1 {offsets = [0, 42], sizes = [8, 362], strides = [1, 1]} : vector<8x512xbf16> to vector<8x362xbf16>
    %cst_29 = arith.constant dense<0.000000e+00> : vector<16x362xf32>
    %46 = tpu.matmul %44, %45, %cst_29 {dimension_numbers = #tpu.dot_dimension_numbers<[1], [0], [0], [1], [0, 0, 1, 1], [], []>} : vector<16x8xbf16>, vector<8x362xbf16>, vector<16x362xf32> -> vector<16x362xf32>
    %47 = arith.addf %42, %46 : vector<16x362xf32>
    %c0_30 = arith.constant 0 : index
    %c0_31 = arith.constant 0 : index
    %48 = vector.load %arg3[%c0_30, %c0_31] : memref<16x1xf32, #tpu.memory_space<vmem>>, vector<16x1xf32>
    %49 = vector.broadcast %48 : vector<16x1xf32> to vector<16x362xf32>
    %50 = arith.addf %47, %49 : vector<16x362xf32>
    %cst_32 = arith.constant 0.000000e+00 : f32
    %51 = vector.broadcast %cst_32 : f32 to vector<16x362xf32>
    %52 = arith.maximumf %50, %51 : vector<16x362xf32>
    %c0_33 = arith.constant 0 : index
    %c0_34 = arith.constant 0 : index
    %53 = vector.load %arg6[%c0_33, %c0_34] : memref<1x362xf32, #tpu.memory_space<vmem>>, vector<1x362xf32>
    %54 = vector.broadcast %53 : vector<1x362xf32> to vector<16x362xf32>
    %55 = arith.mulf %52, %54 : vector<16x362xf32>
    %56 = arith.truncf %55 : vector<16x362xf32> to vector<16x362xbf16>
    %cst_35 = arith.constant 0.000000e+00 : f32
    %57 = vector.broadcast %cst_35 : f32 to vector<3x320xf32>
    %c0_36 = arith.constant 0 : index
    %c0_37 = arith.constant 0 : index
    %c0_38 = arith.constant 0 : index
    %58 = vector.load %arg4[%c0_36, %c0_37, %c0_38] : memref<9x3x16xbf16, #tpu.memory_space<vmem>>, vector<1x3x16xbf16>
    %59 = vector.shape_cast %58 : vector<1x3x16xbf16> to vector<3x16xbf16>
    %60 = vector.extract_strided_slice %56 {offsets = [0, 0], sizes = [16, 320], strides = [1, 1]} : vector<16x362xbf16> to vector<16x320xbf16>
    %cst_39 = arith.constant dense<0.000000e+00> : vector<3x320xf32>
    %61 = tpu.matmul %59, %60, %cst_39 {dimension_numbers = #tpu.dot_dimension_numbers<[1], [0], [0], [1], [0, 0, 1, 1], [], []>} : vector<3x16xbf16>, vector<16x320xbf16>, vector<3x320xf32> -> vector<3x320xf32>
    %62 = arith.addf %57, %61 : vector<3x320xf32>
    %c1_40 = arith.constant 1 : index
    %c0_41 = arith.constant 0 : index
    %c0_42 = arith.constant 0 : index
    %63 = vector.load %arg4[%c1_40, %c0_41, %c0_42] : memref<9x3x16xbf16, #tpu.memory_space<vmem>>, vector<1x3x16xbf16>
    %64 = vector.shape_cast %63 : vector<1x3x16xbf16> to vector<3x16xbf16>
    %65 = vector.extract_strided_slice %56 {offsets = [0, 1], sizes = [16, 320], strides = [1, 1]} : vector<16x362xbf16> to vector<16x320xbf16>
    %cst_43 = arith.constant dense<0.000000e+00> : vector<3x320xf32>
    %66 = tpu.matmul %64, %65, %cst_43 {dimension_numbers = #tpu.dot_dimension_numbers<[1], [0], [0], [1], [0, 0, 1, 1], [], []>} : vector<3x16xbf16>, vector<16x320xbf16>, vector<3x320xf32> -> vector<3x320xf32>
    %67 = arith.addf %62, %66 : vector<3x320xf32>
    %c2_44 = arith.constant 2 : index
    %c0_45 = arith.constant 0 : index
    %c0_46 = arith.constant 0 : index
    %68 = vector.load %arg4[%c2_44, %c0_45, %c0_46] : memref<9x3x16xbf16, #tpu.memory_space<vmem>>, vector<1x3x16xbf16>
    %69 = vector.shape_cast %68 : vector<1x3x16xbf16> to vector<3x16xbf16>
    %70 = vector.extract_strided_slice %56 {offsets = [0, 2], sizes = [16, 320], strides = [1, 1]} : vector<16x362xbf16> to vector<16x320xbf16>
    %cst_47 = arith.constant dense<0.000000e+00> : vector<3x320xf32>
    %71 = tpu.matmul %69, %70, %cst_47 {dimension_numbers = #tpu.dot_dimension_numbers<[1], [0], [0], [1], [0, 0, 1, 1], [], []>} : vector<3x16xbf16>, vector<16x320xbf16>, vector<3x320xf32> -> vector<3x320xf32>
    %72 = arith.addf %67, %71 : vector<3x320xf32>
    %c3_48 = arith.constant 3 : index
    %c0_49 = arith.constant 0 : index
    %c0_50 = arith.constant 0 : index
    %73 = vector.load %arg4[%c3_48, %c0_49, %c0_50] : memref<9x3x16xbf16, #tpu.memory_space<vmem>>, vector<1x3x16xbf16>
    %74 = vector.shape_cast %73 : vector<1x3x16xbf16> to vector<3x16xbf16>
    %75 = vector.extract_strided_slice %56 {offsets = [0, 20], sizes = [16, 320], strides = [1, 1]} : vector<16x362xbf16> to vector<16x320xbf16>
    %cst_51 = arith.constant dense<0.000000e+00> : vector<3x320xf32>
    %76 = tpu.matmul %74, %75, %cst_51 {dimension_numbers = #tpu.dot_dimension_numbers<[1], [0], [0], [1], [0, 0, 1, 1], [], []>} : vector<3x16xbf16>, vector<16x320xbf16>, vector<3x320xf32> -> vector<3x320xf32>
    %77 = arith.addf %72, %76 : vector<3x320xf32>
    %c4_52 = arith.constant 4 : index
    %c0_53 = arith.constant 0 : index
    %c0_54 = arith.constant 0 : index
    %78 = vector.load %arg4[%c4_52, %c0_53, %c0_54] : memref<9x3x16xbf16, #tpu.memory_space<vmem>>, vector<1x3x16xbf16>
    %79 = vector.shape_cast %78 : vector<1x3x16xbf16> to vector<3x16xbf16>
    %80 = vector.extract_strided_slice %56 {offsets = [0, 21], sizes = [16, 320], strides = [1, 1]} : vector<16x362xbf16> to vector<16x320xbf16>
    %cst_55 = arith.constant dense<0.000000e+00> : vector<3x320xf32>
    %81 = tpu.matmul %79, %80, %cst_55 {dimension_numbers = #tpu.dot_dimension_numbers<[1], [0], [0], [1], [0, 0, 1, 1], [], []>} : vector<3x16xbf16>, vector<16x320xbf16>, vector<3x320xf32> -> vector<3x320xf32>
    %82 = arith.addf %77, %81 : vector<3x320xf32>
    %c5_56 = arith.constant 5 : index
    %c0_57 = arith.constant 0 : index
    %c0_58 = arith.constant 0 : index
    %83 = vector.load %arg4[%c5_56, %c0_57, %c0_58] : memref<9x3x16xbf16, #tpu.memory_space<vmem>>, vector<1x3x16xbf16>
    %84 = vector.shape_cast %83 : vector<1x3x16xbf16> to vector<3x16xbf16>
    %85 = vector.extract_strided_slice %56 {offsets = [0, 22], sizes = [16, 320], strides = [1, 1]} : vector<16x362xbf16> to vector<16x320xbf16>
    %cst_59 = arith.constant dense<0.000000e+00> : vector<3x320xf32>
    %86 = tpu.matmul %84, %85, %cst_59 {dimension_numbers = #tpu.dot_dimension_numbers<[1], [0], [0], [1], [0, 0, 1, 1], [], []>} : vector<3x16xbf16>, vector<16x320xbf16>, vector<3x320xf32> -> vector<3x320xf32>
    %87 = arith.addf %82, %86 : vector<3x320xf32>
    %c6_60 = arith.constant 6 : index
    %c0_61 = arith.constant 0 : index
    %c0_62 = arith.constant 0 : index
    %88 = vector.load %arg4[%c6_60, %c0_61, %c0_62] : memref<9x3x16xbf16, #tpu.memory_space<vmem>>, vector<1x3x16xbf16>
    %89 = vector.shape_cast %88 : vector<1x3x16xbf16> to vector<3x16xbf16>
    %90 = vector.extract_strided_slice %56 {offsets = [0, 40], sizes = [16, 320], strides = [1, 1]} : vector<16x362xbf16> to vector<16x320xbf16>
    %cst_63 = arith.constant dense<0.000000e+00> : vector<3x320xf32>
    %91 = tpu.matmul %89, %90, %cst_63 {dimension_numbers = #tpu.dot_dimension_numbers<[1], [0], [0], [1], [0, 0, 1, 1], [], []>} : vector<3x16xbf16>, vector<16x320xbf16>, vector<3x320xf32> -> vector<3x320xf32>
    %92 = arith.addf %87, %91 : vector<3x320xf32>
    %c7_64 = arith.constant 7 : index
    %c0_65 = arith.constant 0 : index
    %c0_66 = arith.constant 0 : index
    %93 = vector.load %arg4[%c7_64, %c0_65, %c0_66] : memref<9x3x16xbf16, #tpu.memory_space<vmem>>, vector<1x3x16xbf16>
    %94 = vector.shape_cast %93 : vector<1x3x16xbf16> to vector<3x16xbf16>
    %95 = vector.extract_strided_slice %56 {offsets = [0, 41], sizes = [16, 320], strides = [1, 1]} : vector<16x362xbf16> to vector<16x320xbf16>
    %cst_67 = arith.constant dense<0.000000e+00> : vector<3x320xf32>
    %96 = tpu.matmul %94, %95, %cst_67 {dimension_numbers = #tpu.dot_dimension_numbers<[1], [0], [0], [1], [0, 0, 1, 1], [], []>} : vector<3x16xbf16>, vector<16x320xbf16>, vector<3x320xf32> -> vector<3x320xf32>
    %97 = arith.addf %92, %96 : vector<3x320xf32>
    %c8_68 = arith.constant 8 : index
    %c0_69 = arith.constant 0 : index
    %c0_70 = arith.constant 0 : index
    %98 = vector.load %arg4[%c8_68, %c0_69, %c0_70] : memref<9x3x16xbf16, #tpu.memory_space<vmem>>, vector<1x3x16xbf16>
    %99 = vector.shape_cast %98 : vector<1x3x16xbf16> to vector<3x16xbf16>
    %100 = vector.extract_strided_slice %56 {offsets = [0, 42], sizes = [16, 320], strides = [1, 1]} : vector<16x362xbf16> to vector<16x320xbf16>
    %cst_71 = arith.constant dense<0.000000e+00> : vector<3x320xf32>
    %101 = tpu.matmul %99, %100, %cst_71 {dimension_numbers = #tpu.dot_dimension_numbers<[1], [0], [0], [1], [0, 0, 1, 1], [], []>} : vector<3x16xbf16>, vector<16x320xbf16>, vector<3x320xf32> -> vector<3x320xf32>
    %102 = arith.addf %97, %101 : vector<3x320xf32>
    %c0_72 = arith.constant 0 : index
    %c0_73 = arith.constant 0 : index
    %103 = vector.load %arg5[%c0_72, %c0_73] : memref<3x1xf32, #tpu.memory_space<vmem>>, vector<3x1xf32>
    %104 = vector.broadcast %103 : vector<3x1xf32> to vector<3x320xf32>
    %105 = arith.addf %102, %104 : vector<3x320xf32>
    %106 = math.tanh %105 : vector<3x320xf32>
    %c0_74 = arith.constant 0 : index
    %c0_75 = arith.constant 0 : index
    %c0_76 = arith.constant 0 : index
    %107 = vector.load %arg7[%c0_74, %c0_75, %c0_76] : memref<1x3x320xf32, #tpu.memory_space<vmem>>, vector<1x3x320xf32>
    %108 = vector.shape_cast %107 : vector<1x3x320xf32> to vector<3x320xf32>
    %109 = vector.shape_cast %106 : vector<3x320xf32> to vector<1x3x320xf32>
    tpu.vector_store %arg7[%c0_74, %c0_75, %c0_76], %109 {strides = array<i32>} : memref<1x3x320xf32, #tpu.memory_space<vmem>>, vector<1x3x320xf32>,
    return
  }
  func.func @transform_0(%arg0: i32) -> (i32, i32, i32) {
    %c0_i32 = arith.constant 0 : i32
    %c0_i32_0 = arith.constant 0 : i32
    %c0_i32_1 = arith.constant 0 : i32
    return %arg0, %c0_i32, %c0_i32_0 : i32, i32, i32
  }
  func.func @transform_1(%arg0: i32) -> (i32, i32, i32) {
    %c0_i32 = arith.constant 0 : i32
    %c0_i32_0 = arith.constant 0 : i32
    %c0_i32_1 = arith.constant 0 : i32
    %c0_i32_2 = arith.constant 0 : i32
    return %c0_i32, %c0_i32_0, %c0_i32_1 : i32, i32, i32
  }
  func.func @transform_2(%arg0: i32) -> (i32, i32) {
    %c0_i32 = arith.constant 0 : i32
    %c0_i32_0 = arith.constant 0 : i32
    %c0_i32_1 = arith.constant 0 : i32
    return %c0_i32, %c0_i32_0 : i32, i32
  }
  func.func @transform_3(%arg0: i32) -> (i32, i32, i32) {
    %c0_i32 = arith.constant 0 : i32
    %c0_i32_0 = arith.constant 0 : i32
    %c0_i32_1 = arith.constant 0 : i32
    %c0_i32_2 = arith.constant 0 : i32
    return %c0_i32, %c0_i32_0, %c0_i32_1 : i32, i32, i32
  }
  func.func @transform_4(%arg0: i32) -> (i32, i32) {
    %c0_i32 = arith.constant 0 : i32
    %c0_i32_0 = arith.constant 0 : i32
    %c0_i32_1 = arith.constant 0 : i32
    return %c0_i32, %c0_i32_0 : i32, i32
  }
  func.func @transform_5(%arg0: i32) -> (i32, i32) {
    %c0_i32 = arith.constant 0 : i32
    %c0_i32_0 = arith.constant 0 : i32
    %c0_i32_1 = arith.constant 0 : i32
    return %c0_i32, %c0_i32_0 : i32, i32
  }
  func.func @transform_6(%arg0: i32) -> (i32, i32, i32) {
    %c0_i32 = arith.constant 0 : i32
    %c0_i32_0 = arith.constant 0 : i32
    %c0_i32_1 = arith.constant 0 : i32
    return %arg0, %c0_i32, %c0_i32_0 : i32, i32, i32
  }
}

</mosaic_0001>

<bundles_post_ra>
// kernel: pix2pix_forward.1
= control target key start
LH: loop header
LB: loop body
LE: loop exit
PB: predicated region body
PF: predicated region fallthrough
CT: control target
= control target key end

     0   :  { %s2699_s21 = smov 0   ;;  %s3034_s0 = inlined_call_operand.vmem [shape: bf16[2,8,512], index: 0, kind: input, shape index: {}]   ;;  %s3035_s1 = inlined_call_operand.vmem [shape: bf16[9,16,8], index: 1, kind: input, shape index: {}]   ;;  %s3036_s2 = inlined_call_operand.vmem [shape: f32[16,1], index: 2, kind: input, shape index: {}]   ;;  %s3037_s3 = inlined_call_operand.vmem [shape: bf16[9,3,16], index: 3, kind: input, shape index: {}]   ;;  %s3038_s4 = inlined_call_operand.vmem [shape: f32[3,1], index: 4, kind: input, shape index: {}]   ;;  %s3039_s5 = inlined_call_operand.vmem [shape: f32[1,362], index: 5, kind: input, shape index: {}]   ;;  %s3040_s6 = inlined_call_operand.vmem [shape: f32[2,3,320], index: 6, kind: output, shape index: {}]  }
   0x1 LB: > { %s2335_s22 = sadd.s32 4294967295, %s2651_s21   ;;  %p2339_p0 = scmp.ge.s32.totalorder %s2651_s21, 1  ;;  %s2651_s21 = sphi %s2699_s21, %s16_s21  }
   0x2   : > { %p212_p1 = scmp.lt.s32.totalorder %s2651_s21, 3 }
   0x4   : > { %p213_p2 = pnand %p2339_p0, %p212_p1 }
   0x5   : > { %p242_p3 = scmp.lt.s32.totalorder (!%p213_p2), %s2335_s22, 1  ;;  %v2653_v0 = vmov (!%p213_p2), 0.0   ;;  %vm2654_vm0 = vmmov (!%p213_p2), 0   ;;  %v2655_v1 = vmov (!%p213_p2), 0   ;;  %s2656_s27 = smov (!%p213_p2), 127   ;;  %v1325_v8 = vld [vmem:[%s3036_s2] sm:$0xff] (!%p213_p2) }
   0x6   : > { %216 = sbr.rel (%p213_p2) target bundleno = 881 (0x371), region = 44  ;;  %2464 = vmatprep.subr.bf16.mxu1 (!%p213_p2), %v2653_v0  ;;  %2466 = vmatprep.mubr.msk.bf16.mxu1 (!%p213_p2), %vm2654_vm0, %v2653_v0  ;;  %s2657_s28 = smov (!%p213_p2), 126   ;;  %v1326_v9 = vld [vmem:[%s3036_s2 + $0x8] sm:$0xff] (!%p213_p2)  ;;  %vm286_vm1 = vcmask (!%p213_p2), 1043456   ;;  %vm282_vm2 = vcmask (!%p213_p2), 64512   ;;  %vm279_vm3 = vcmask (!%p213_p2), 1039360  }
   0x7   : > { %328 = vmatprep.mubr.bf16.mxu0 (!%p213_p2), %v2655_v1  ;;  %2624 = vset.pattern.permute.xlu1 (!%p213_p2), %v2655_v1  ;;  %s2658_s29 = smov (!%p213_p2), 108   ;;  %s2659_s30 = smov (!%p213_p2), 107   ;;  %v2630_v13 = vld [vmem:[%s3035_s1 + $0x8] sm:$0xff] (!%p213_p2)   ;;  %vm495_vm4 = vcmask (!%p213_p2), 1031168   ;;  %v2631_v23 = vld [vmem:[%s3035_s1] sm:$0xff] (!%p213_p2)   ;;  %v2632_v31 = vld [vmem:[%s3035_s1 + $0x10] sm:$0xff] (!%p213_p2)  }
   0x8   : > { %2625 = vset.pattern.permute.xlu0 (!%p213_p2), %v2655_v1  ;;  %s2660_s7 = smov (!%p213_p2), 106   ;;  %s2661_s8 = smov (!%p213_p2), 88   ;;  %vm614_vm5 = vcmask (!%p213_p2), 883712   ;;  %v2633_v39 = vld [vmem:[%s3035_s1 + $0x18] sm:$0xff] (!%p213_p2)   ;;  %vm733_vm6 = vcmask (!%p213_p2), 875520   ;;  %v2634_v47 = vld [vmem:[%s3035_s1 + $0x20] sm:$0xff] (!%p213_p2)  }
   0x9   : > { %s2662_s9 = smov (!%p213_p2), 87   ;;  %s2663_s10 = smov (!%p213_p2), 86   ;;  %vm975_vm7 = vcmask (!%p213_p2), 719872   ;;  %v2635_v55 = vld [vmem:[%s3035_s1 + $0x28] sm:$0xff] (!%p213_p2)   ;;  %vm852_vm8 = vcmask (!%p213_p2), 867328   ;;  %vm1097_vm9 = vcmask (!%p213_p2), 711680  }
   0xa   : > { %v2636_v62 = vld [vmem:[%s3035_s1 + $0x30] sm:$0xff] (!%p213_p2)   ;;  %vm1219_vm10 = vcmask (!%p213_p2), 703488   ;;  %vm1392_vm11 = vcmask (!%p213_p2), 130048   ;;  %vm2278_vm12 = vcmask (!%p213_p2), 518144  }
   0xd   : > { %s3042_s22 = smov (!%p242_p3, %s2335_s22), 1 }
   0xe   : > { %s2427_s23 = sshll.u32 %s3042_s22, 4  ;;  %s2604_s19 = smul.u32 12, %s3042_s22 }
   0xf   : > { %s246_s26 = scalar_lea.vmem %s3034_s0, %s2427_s23 }
  0x10   : > { %v254_v2 = vld [vmem:[%s246_s26 + $0x8] sm:$0xff]  ;;  %v253_v3 = vld [vmem:[%s246_s26] sm:$0xff] }
  0x11   : > { %v2348_v4 = vcombine.low %v254_v2, %v254_v2  ;;  %v2719_v5 = vcombine.low %v253_v3, %v253_v3  ;;  %v2347_v6 = vcombine.high %v253_v3, %v253_v3  ;;  %v2383_v7 = vcombine.high %v254_v2, %v254_v2 }
  0x13   : > { %277 = vrot.lane.b32.xlu1 %v2348_v4, %s2656_s27  ;;  %273 = vrot.lane.b32.xlu0 %v2719_v5, %s2656_s27  ;;  %v395_v14 = vsel %vm286_vm1, %v2348_v4, 0  ;;  %v389_v20 = vsel %vm286_vm1, %v2719_v5, 0 }
  0x17   : > { %275 = vrot.lane.b32.xlu0 %v2347_v6, %s2656_s27  ;;  %489 = vrot.lane.b32.xlu1 %v2719_v5, %s2657_s28 }
  0x1b   : > { %493 = vrot.lane.b32.xlu1 %v2348_v4, %s2657_s28  ;;  %491 = vrot.lane.b32.xlu0 %v2347_v6, %s2657_s28 }
  0x1f   : > { %608 = vrot.lane.b32.xlu0 %v2719_v5, %s2658_s29  ;;  %610 = vrot.lane.b32.xlu1 %v2347_v6, %s2658_s29 }
  0x23   : > { %612 = vrot.lane.b32.xlu0 %v2348_v4, %s2658_s29  ;;  %727 = vrot.lane.b32.xlu1 %v2719_v5, %s2659_s30 }
  0x27   : > { %729 = vrot.lane.b32.xlu0 %v2347_v6, %s2659_s30  ;;  %731 = vrot.lane.b32.xlu1 %v2348_v4, %s2659_s30 }
  0x2b   : > { %846 = vrot.lane.b32.xlu0 %v2719_v5, %s2660_s7  ;;  %848 = vrot.lane.b32.xlu1 %v2347_v6, %s2660_s7 }
  0x2f   : > { %850 = vrot.lane.b32.xlu0 %v2348_v4, %s2660_s7  ;;  %967 = vrot.lane.b32.xlu1 %v2719_v5, %s2661_s8 }
  0x33   : > { %969 = vrot.lane.b32.xlu0 %v2347_v6, %s2661_s8  ;;  %971 = vrot.lane.b32.xlu1 %v2348_v4, %s2661_s8 }
  0x37   : > { %973 = vrot.lane.b32.xlu0 %v2383_v7, %s2661_s8  ;;  %1089 = vrot.lane.b32.xlu1 %v2719_v5, %s2662_s9 }
  0x3b   : > { %1091 = vrot.lane.b32.xlu0 %v2347_v6, %s2662_s9  ;;  %1093 = vrot.lane.b32.xlu1 %v2348_v4, %s2662_s9 }
  0x3f   : > { %1095 = vrot.lane.b32.xlu0 %v2383_v7, %s2662_s9  ;;  %1215 = vrot.lane.b32.xlu1 %v2348_v4, %s2663_s10 }
  0x43   : > { %1217 = vrot.lane.b32.xlu0 %v2383_v7, %s2663_s10  ;;  %1211 = vrot.lane.b32.xlu1 %v2719_v5, %s2663_s10 }
  0x47   : > { %1213 = vrot.lane.b32.xlu0 %v2347_v6, %s2663_s10  ;;  %1329 = vperm.xlu1 %2624, %v1325_v8   ;;  %v2637_v8 = vld [vmem:[%s3035_s1 + $0x38] sm:$0xff]  }
  0x4b   : > { %1334 = vperm.xlu0 %2625, %v1326_v9  }
  0x85   : > { %v278_v10 = vpop.permute.xlu1 %277  ;;  %v274_v11 = vpop.permute.xlu0 %273 }
  0x86   : > { %v294_v12 = vsel %vm286_vm1, %v278_v10, 0 }
  0x87   : > { %2465 = vmatpush3.bf16.msra.mxu1 %v294_v12 }
  0x88   : > { %2470 = vmatprep.subr.bf16.mxu1 %v2653_v0 }
  0x89   : > { %v276_v15 = vpop.permute.xlu0 %275  ;;  %v490_v16 = vpop.permute.xlu1 %489 }
  0x8a   : > { %2467 = vmatmul.mubr.msk.bf16.vlgmr.msra.gmra.mrb[0].mxu1 %vm282_vm2, %v2630_v13  ;;  %v281_v17 = vsel %vm279_vm3, %v276_v15, %v278_v10  ;;  %v280_v18 = vsel %vm279_vm3, %v274_v11, %v276_v15  ;;  %v2638_v11 = vld [vmem:[%s3035_s1 + $0x40] sm:$0xff]  }
  0x8b   : > { %2349 = vmatprep.subr.msk.bf16.mxu0 %vm286_vm1, %v281_v17  ;;  %v288_v19 = vsel %vm286_vm1, %v280_v18, 0  ;;  %2471 = vmatpush3.bf16.msra.mxu1 %v395_v14 }
  0x8c   : > { %297 = vmatpush1.bf16.msra.mxu0 %v288_v19  ;;  %2472 = vmatprep.mubr.msk.bf16.mxu1 %vm2654_vm0, %v2653_v0 }
  0x8d   : > { %2353 = vmatprep.subr.msk.bf16.mxu0 %vm286_vm1, %v2347_v6  ;;  %v494_v21 = vpop.permute.xlu1 %493  ;;  %v492_v22 = vpop.permute.xlu0 %491  ;;  %2476 = vmatprep.subr.bf16.mxu1 %v2653_v0 }
  0x8e   : > { %v497_v24 = vsel %vm495_vm4, %v492_v22, %v494_v21  ;;  %v508_v25 = vsel %vm286_vm1, %v494_v21, 0  ;;  %v496_v30 = vsel %vm495_vm4, %v490_v16, %v492_v22 }
  0x8f   : > { %2350 = vmatmul.mubr.msk.bf16.vlgmr.msra.gmra.mrb[0].mxu0 %vm282_vm2, %v2630_v13  ;;  %v502_v33 = vsel %vm286_vm1, %v496_v30, 0 }
  0x90   : > { %398 = vmatpush1.bf16.msra.mxu0 %v389_v20  ;;  %429 = vmatprep.mubr.bf16.mxu0 %v2655_v1 }
  0x91   : > { %v609_v26 = vpop.permute.xlu0 %608  ;;  %2359 = vmatprep.subr.msk.bf16.mxu0 %vm286_vm1, %v497_v24  ;;  %v611_v27 = vpop.permute.xlu1 %610 }
  0x92   : > { %2473 = vmatmul.mubr.msk.bf16.vlgmr.msra.gmra.mrb[4].mxu1 %vm282_vm2, %v2631_v23  ;;  %v615_v43 = vsel %vm614_vm5, %v609_v26, %v611_v27 }
  0x93   : > { %2477 = vmatpush3.bf16.msra.mxu1 %v508_v25  ;;  %2478 = vmatprep.mubr.msk.bf16.mxu1 %vm2654_vm0, %v2653_v0  ;;  %v621_v44 = vsel %vm286_vm1, %v615_v43, 0 }
  0x94   : > { %2482 = vmatprep.subr.bf16.mxu1 %v2653_v0 }
  0x95   : > { %v613_v28 = vpop.permute.xlu0 %612  ;;  %v728_v29 = vpop.permute.xlu1 %727 }
  0x96   : > { %v627_v32 = vsel %vm286_vm1, %v613_v28, 0  ;;  %v616_v36 = vsel %vm614_vm5, %v611_v27, %v613_v28 }
  0x99   : > { %v730_v34 = vpop.permute.xlu0 %729  ;;  %v732_v35 = vpop.permute.xlu1 %731 }
  0x9a   : > { %2479 = vmatmul.mubr.msk.bf16.vlgmr.msra.gmra.mrb[8].mxu1 %vm282_vm2, %v2632_v31  ;;  %v746_v40 = vsel %vm286_vm1, %v732_v35, 0  ;;  %v735_v46 = vsel %vm733_vm6, %v730_v34, %v732_v35  ;;  %v734_v54 = vsel %vm733_vm6, %v728_v29, %v730_v34 }
  0x9b   : > { %2354 = vmatmul.mubr.msk.bf16.vlgmr.msra.gmra.mrb[0].mxu0 %vm282_vm2, %v2631_v23  ;;  %2483 = vmatpush3.bf16.msra.mxu1 %v627_v32  ;;  %v740_v57 = vsel %vm286_vm1, %v734_v54, 0 }
  0x9c   : > { %511 = vmatpush1.bf16.msra.mxu0 %v502_v33  ;;  %2484 = vmatprep.mubr.msk.bf16.mxu1 %vm2654_vm0, %v2653_v0 }
  0x9d   : > { %542 = vmatprep.mubr.bf16.mxu0 %v2655_v1  ;;  %2488 = vmatprep.subr.bf16.mxu1 %v2653_v0  ;;  %v847_v37 = vpop.permute.xlu0 %846  ;;  %v849_v38 = vpop.permute.xlu1 %848 }
  0x9e   : > { %2365 = vmatprep.subr.msk.bf16.mxu0 %vm286_vm1, %v616_v36  ;;  %v853_v2 = vsel %vm852_vm8, %v847_v37, %v849_v38 }
  0x9f   : > { %v859_v5 = vsel %vm286_vm1, %v853_v2, 0  ;;  %v1351_v2 = vlaneseq }
  0xa1   : > { %v851_v41 = vpop.permute.xlu0 %850  ;;  %v2809_v42 = vpop.permute.xlu1 %967 }
  0xa2   : > { %2485 = vmatmul.mubr.msk.bf16.vlgmr.msra.gmra.mrb[12].mxu1 %vm282_vm2, %v2633_v39  ;;  %v865_v49 = vsel %vm286_vm1, %v851_v41, 0  ;;  %v854_v60 = vsel %vm852_vm8, %v849_v38, %v851_v41 }
  0xa3   : > { %2489 = vmatpush3.bf16.msra.mxu1 %v746_v40  ;;  %2490 = vmatprep.mubr.msk.bf16.mxu1 %vm2654_vm0, %v2653_v0 }
  0xa4   : > { %2494 = vmatprep.subr.bf16.mxu1 %v2653_v0 }
  0xa5   : > { %v970_v45 = vpop.permute.xlu0 %969  ;;  %v972_v48 = vpop.permute.xlu1 %971 }
  0xa6   : > { %v977_v7 = vsel %vm975_vm7, %v970_v45, %v972_v48  ;;  %v976_v10 = vsel %vm975_vm7, %v2809_v42, %v970_v45 }
  0xa7   : > { %2360 = vmatmul.mubr.msk.bf16.vlgmr.msra.gmra.mrb[0].mxu0 %vm282_vm2, %v2632_v31  ;;  %v983_v12 = vsel %vm286_vm1, %v976_v10, 0 }
  0xa8   : > { %630 = vmatpush1.bf16.msra.mxu0 %v621_v44  ;;  %661 = vmatprep.mubr.bf16.mxu0 %v2655_v1 }
  0xa9   : > { %2371 = vmatprep.subr.msk.bf16.mxu0 %vm286_vm1, %v735_v46  ;;  %v974_v50 = vpop.permute.xlu0 %973  ;;  %v1090_v51 = vpop.permute.xlu1 %1089 }
  0xaa   : > { %2491 = vmatmul.mubr.msk.bf16.vlgmr.msra.gmra.mrb[16].mxu1 %vm282_vm2, %v2634_v47  ;;  %v978_v52 = vsel %vm975_vm7, %v972_v48, %v974_v50 }
  0xab   : > { %2495 = vmatpush3.bf16.msra.mxu1 %v865_v49  ;;  %2496 = vmatprep.mubr.msk.bf16.mxu1 %vm2654_vm0, %v2653_v0  ;;  %v989_v56 = vsel %vm286_vm1, %v978_v52, 0 }
  0xac   : > { %2500 = vmatprep.subr.bf16.mxu1 %v2653_v0 }
  0xad   : > { %v1092_v53 = vpop.permute.xlu0 %1091  ;;  %v1094_v58 = vpop.permute.xlu1 %1093 }
  0xae   : > { %v1099_v13 = vsel %vm1097_vm9, %v1092_v53, %v1094_v58  ;;  %v1098_v14 = vsel %vm1097_vm9, %v1090_v51, %v1092_v53 }
  0xaf   : > { %v1105_v16 = vsel %vm286_vm1, %v1098_v14, 0 }
  0xb1   : > { %v1096_v59 = vpop.permute.xlu0 %1095  ;;  %v1216_v3 = vpop.permute.xlu1 %1215 }
  0xb2   : > { %2497 = vmatmul.mubr.msk.bf16.vlgmr.msra.gmra.mrb[20].mxu1 %vm282_vm2, %v2635_v55  ;;  %v1100_v61 = vsel %vm1097_vm9, %v1094_v58, %v1096_v59 }
  0xb3   : > { %2366 = vmatmul.mubr.msk.bf16.vlgmr.msra.gmra.mrb[0].mxu0 %vm282_vm2, %v2633_v39  ;;  %2501 = vmatpush3.bf16.msra.mxu1 %v989_v56  ;;  %v1111_v63 = vsel %vm286_vm1, %v1100_v61, 0 }
  0xb4   : > { %749 = vmatpush1.bf16.msra.mxu0 %v740_v57  ;;  %2502 = vmatprep.mubr.msk.bf16.mxu1 %vm2654_vm0, %v2653_v0 }
  0xb5   : > { %780 = vmatprep.mubr.bf16.mxu0 %v2655_v1  ;;  %2506 = vmatprep.subr.bf16.mxu1 %v2653_v0  ;;  %v1218_v4 = vpop.permute.xlu0 %1217  ;;  %v1212_v18 = vpop.permute.xlu1 %1211 }
  0xb6   : > { %2377 = vmatprep.subr.msk.bf16.mxu0 %vm286_vm1, %v854_v60  ;;  %v1222_v6 = vsel %vm1219_vm10, %v1216_v3, %v1218_v4 }
  0xb7   : > { %v1233_v9 = vsel %vm286_vm1, %v1222_v6, 0  ;;  %v1352_v6 = vshrl.u32 %v1351_v2, 7 }
  0xb9   : > { %v1214_v15 = vpop.permute.xlu0 %1213 }
  0xba   : > { %2503 = vmatmul.mubr.msk.bf16.vlgmr.msra.gmra.mrb[24].mxu1 %vm282_vm2, %v2636_v62  ;;  %v1221_v17 = vsel %vm1219_vm10, %v1214_v15, %v1216_v3  ;;  %v1220_v19 = vsel %vm1219_vm10, %v1212_v18, %v1214_v15 }
  0xbb   : > { %2507 = vmatpush3.bf16.msra.mxu1 %v1111_v63  ;;  %2508 = vmatprep.mubr.msk.bf16.mxu1 %vm2654_vm0, %v2653_v0  ;;  %v1227_v20 = vsel %vm286_vm1, %v1220_v19, 0 }
  0xbc   : > { %2512 = vmatprep.subr.bf16.mxu1 %v2653_v0 }
  0xbf   : > { %2372 = vmatmul.mubr.msk.bf16.vlgmr.msra.gmra.mrb[0].mxu0 %vm282_vm2, %v2634_v47 }
  0xc0   : > { %868 = vmatpush1.bf16.msra.mxu0 %v859_v5  ;;  %899 = vmatprep.mubr.bf16.mxu0 %v2655_v1 }
  0xc1   : > { %2384 = vmatprep.subr.msk.bf16.mxu0 %vm286_vm1, %v977_v7 }
  0xc2   : > { %2509 = vmatmul.mubr.msk.bf16.vlgmr.msra.gmra.mrb[28].mxu1 %vm282_vm2, %v2637_v8 }
  0xc3   : > { %2513 = vmatpush3.bf16.msra.mxu1 %v1233_v9  ;;  %2514 = vmatprep.mubr.msk.bf16.mxu1 %vm2654_vm0, %v2653_v0 }
  0xc4   : > { %2518 = vmatprep.subr.bf16.mxu1 %v2653_v0 }
  0xca   : > { %2515 = vmatmul.mubr.msk.bf16.vlgmr.msra.gmra.mrb[32].mxu1 %vm282_vm2, %v2638_v11  ;;  %v1335_v14 = vpop.permute.xlu0 %1334 }
  0xcb   : > { %2378 = vmatmul.mubr.msk.bf16.vlgmr.msra.gmra.mrb[0].mxu0 %vm282_vm2, %v2635_v55  ;;  %2520 = vmatprep.mubr.msk.bf16.mxu1 %vm2654_vm0, %v2653_v0 }
  0xcc   : > { %992 = vmatpush1.bf16.msra.mxu0 %v983_v12  ;;  %1023 = vmatprep.mubr.bf16.mxu0 %v2655_v1  ;;  %v1349_v12 = vld [vmem:[%s3039_s5] sm:$0x7] }
  0xcd   : > { %2390 = vmatprep.subr.msk.bf16.mxu0 %vm286_vm1, %v1099_v13 }
  0xd7   : > { %2385 = vmatmul.mubr.msk.bf16.vlgmr.msra.gmra.mrb[0].mxu0 %vm282_vm2, %v2636_v62 }
  0xd8   : > { %1114 = vmatpush1.bf16.msra.mxu0 %v1105_v16  ;;  %1145 = vmatprep.mubr.bf16.mxu0 %v2655_v1 }
  0xd9   : > { %2396 = vmatprep.subr.msk.bf16.mxu0 %vm286_vm1, %v1221_v17 }
  0xe3   : > { %2391 = vmatmul.mubr.msk.bf16.vlgmr.msra.gmra.mrb[0].mxu0 %vm282_vm2, %v2637_v8  ;;  %v1330_v8 = vpop.permute.xlu1 %1329 }
  0xe4   : > { %1236 = vmatpush1.bf16.msra.mxu0 %v1227_v20  ;;  %1267 = vmatprep.mubr.bf16.mxu0 %v2655_v1 }
  0xef   : > { %2397 = vmatmul.mubr.msk.bf16.vlgmr.msra.gmra.mrb[0].mxu0 %vm282_vm2, %v2638_v11  ;;  %v1361_v11 = vsub.s32 2, %v1352_v6 }
  0xf0   : > { %1428 = vmatprep.mubr.bf16.mxu0 %v2655_v1 }
  0xf1   : > { %v1362_v18 = vrot.slane %v1349_v12, %v1361_v11 }
 0x15d   : > { %v373_v21 = vpop.f32.mrb[0].mxu1 }
 0x15e   : > { %v2468_v22 = vpop.f32.mrb[1].mxu1 }
 0x15f   : > { %v376_v23 = vpop.f32.mrb[2].mxu1 }
 0x160   : > { %v2469_v24 = vpop.f32.mrb[3].mxu1 }
 0x165   : > { %v474_v25 = vpop.f32.mrb[4].mxu1 }
 0x166   : > { %v475_v26 = vadd.f32 %v474_v25, %v373_v21  ;;  %v2474_v27 = vpop.f32.mrb[5].mxu1  ;;  %v1353_v25 = vsub.s32 0, %v1352_v6 }
 0x167   : > { %v477_v28 = vpop.f32.mrb[6].mxu1  ;;  %v1357_v27 = vsub.s32 1, %v1352_v6 }
 0x168   : > { %v478_v29 = vadd.f32 %v477_v28, %v376_v23  ;;  %v2475_v30 = vpop.f32.mrb[7].mxu1 }
 0x16d   : > { %v587_v31 = vpop.f32.mrb[8].mxu1 }
 0x16e   : > { %v596_v32 = vadd.f32 %v587_v31, %v475_v26  ;;  %v2480_v33 = vpop.f32.mrb[9].mxu1 }
 0x16f   : > { %v590_v34 = vpop.f32.mrb[10].mxu1  ;;  %v1354_v33 = vrot.slane %v1349_v12, %v1353_v25 }
 0x170   : > { %v599_v35 = vadd.f32 %v590_v34, %v478_v29  ;;  %v2481_v36 = vpop.f32.mrb[11].mxu1 }
 0x175   : > { %v706_v37 = vpop.f32.mrb[12].mxu1 }
 0x176   : > { %v715_v38 = vadd.f32 %v706_v37, %v596_v32  ;;  %v2486_v39 = vpop.f32.mrb[13].mxu1  ;;  %v1358_v37 = vrot.slane %v1349_v12, %v1357_v27 }
 0x177   : > { %v709_v40 = vpop.f32.mrb[14].mxu1 }
 0x178   : > { %v718_v41 = vadd.f32 %v709_v40, %v599_v35  ;;  %v2487_v42 = vpop.f32.mrb[15].mxu1 }
 0x17d   : > { %v825_v43 = vpop.f32.mrb[16].mxu1 }
 0x17e   : > { %v834_v44 = vadd.f32 %v825_v43, %v715_v38  ;;  %v2492_v45 = vpop.f32.mrb[17].mxu1 }
 0x17f   : > { %v828_v46 = vpop.f32.mrb[18].mxu1 }
 0x180   : > { %v837_v47 = vadd.f32 %v828_v46, %v718_v41  ;;  %v2493_v48 = vpop.f32.mrb[19].mxu1 }
 0x185   : > { %v944_v49 = vpop.f32.mrb[20].mxu1 }
 0x186   : > { %v953_v50 = vadd.f32 %v944_v49, %v834_v44  ;;  %v2498_v51 = vpop.f32.mrb[21].mxu1 }
 0x187   : > { %v947_v52 = vpop.f32.mrb[22].mxu1 }
 0x188   : > { %v956_v53 = vadd.f32 %v947_v52, %v837_v47  ;;  %v2499_v54 = vpop.f32.mrb[23].mxu1  ;;  %v2261_v47 = vld [vmem:[%s3038_s4] sm:$0x7] }
 0x18d   : > { %v1068_v55 = vpop.f32.mrb[24].mxu1 }
 0x18e   : > { %v1077_v56 = vadd.f32 %v1068_v55, %v953_v50  ;;  %v2504_v57 = vpop.f32.mrb[25].mxu1 }
 0x18f   : > { %v1071_v58 = vpop.f32.mrb[26].mxu1 }
 0x190   : > { %v1080_v59 = vadd.f32 %v1071_v58, %v956_v53  ;;  %v2505_v60 = vpop.f32.mrb[27].mxu1  ;;  %v2399_v53 = vld [vmem:[%s3037_s3 + $0x2] sm:$0x3] }
 0x195   : > { %v1190_v61 = vpop.f32.mrb[28].mxu1 }
 0x196   : > { %v1199_v62 = vadd.f32 %v1190_v61, %v1077_v56  ;;  %v2510_v63 = vpop.f32.mrb[29].mxu1 }
 0x197   : > { %v1193_v3 = vpop.f32.mrb[30].mxu1 }
 0x198   : > { %v1202_v4 = vadd.f32 %v1193_v3, %v1080_v59  ;;  %v2511_v5 = vpop.f32.mrb[31].mxu1  ;;  %v1375_v59 = vld [vmem:[%s3037_s3] sm:$0x3]  ;;  %v2404_v3 = vld [vmem:[%s3037_s3 + $0x4] sm:$0x3] }
 0x19d   : > { %v1312_v7 = vpop.f32.mrb[32].mxu1 }
 0x19e   : > { %v1321_v9 = vadd.f32 %v1312_v7, %v1199_v62  ;;  %v2516_v10 = vpop.f32.mrb[33].mxu1 }
 0x19f   : > { %v1315_v13 = vpop.f32.mrb[34].mxu1 }
 0x1a0   : > { %v1339_v15 = vadd.f32 %v1330_v8, %v1321_v9  ;;  %v1324_v16 = vadd.f32 %v1315_v13, %v1202_v4  ;;  %v2517_v17 = vpop.f32.mrb[35].mxu1  ;;  %v2407_v9 = vld [vmem:[%s3037_s3 + $0x6] sm:$0x3] }
 0x1a2   : > { %v1345_v19 = vmax.f32 %v1339_v15, 0.0  ;;  %v1342_v20 = vadd.f32 %v1335_v14, %v1324_v16  ;;  %v2410_v15 = vld [vmem:[%s3037_s3 + $0x8] sm:$0x3] }
 0x1a4   : > { %v1348_v21 = vmax.f32 %v1342_v20, 0.0  ;;  %v1368_v22 = vmul.f32 %v1362_v18, %v1345_v19  ;;  %v2413_v20 = vld [vmem:[%s3037_s3 + $0xa] sm:$0x3] }
 0x1a6   : > { %v1371_v23 = vmul.f32 %v1362_v18, %v1348_v21 }
 0x1a8   : > { %v2896_v24 = vpack.c.bf16 %v1371_v23, %v1368_v22 }
 0x1c2   : > { %v1269_v26 = vpop.f32.mrb[0].mxu0 }
 0x1c3   : > { %v1337_v28 = vadd.f32 %v1330_v8, %v1269_v26  ;;  %v1271_v29 = vpop.f32.mrb[1].mxu0  ;;  %v2416_v26 = vld [vmem:[%s3037_s3 + $0xc] sm:$0x3] }
 0x1c4   : > { %v1338_v30 = vadd.f32 %v1330_v8, %v1271_v29  ;;  %v1273_v31 = vpop.f32.mrb[2].mxu0 }
 0x1c5   : > { %v1343_v32 = vmax.f32 %v1337_v28, 0.0  ;;  %v1340_v34 = vadd.f32 %v1335_v14, %v1273_v31  ;;  %v1275_v35 = vpop.f32.mrb[3].mxu0  ;;  %v2419_v31 = vld [vmem:[%s3037_s3 + $0xe] sm:$0x3] }
 0x1c6   : > { %v1344_v36 = vmax.f32 %v1338_v30, 0.0  ;;  %v1341_v38 = vadd.f32 %v1335_v14, %v1275_v35 }
 0x1c7   : > { %v1346_v39 = vmax.f32 %v1340_v34, 0.0  ;;  %v1366_v41 = vmul.f32 %v1354_v33, %v1343_v32  ;;  %v2422_v34 = vld [vmem:[%s3037_s3 + $0x10] sm:$0x3] }
 0x1c8   : > { %v1347_v40 = vmax.f32 %v1341_v38, 0.0  ;;  %v1367_v43 = vmul.f32 %v1358_v37, %v1344_v36 }
 0x1c9   : > { %v1369_v42 = vmul.f32 %v1354_v33, %v1346_v39 }
 0x1ca   : > { %v1370_v44 = vmul.f32 %v1358_v37, %v1347_v40 }
 0x1cb   : > { %v1372_v45 = vpack.c.bf16 %v1369_v42, %v1366_v41 }
 0x1cc   : > { %v1373_v46 = vpack.c.bf16 %v1370_v44, %v1367_v43 }
 0x1cd   : > { %1381 = vrot.lane.b32.xlu0 %v1372_v45, %s2656_s27 }
 0x1ce   : > { %1383 = vrot.lane.b32.xlu1 %v1373_v46, %s2656_s27 }
 0x1d1   : > { %1567 = vrot.lane.b32.xlu0 %v2896_v24, %s2657_s28 }
 0x1d2   : > { %1385 = vrot.lane.b32.xlu1 %v2896_v24, %s2656_s27 }
 0x1d5   : > { %1665 = vrot.lane.b32.xlu0 %v1373_v46, %s2658_s29 }
 0x1d6   : > { %1565 = vrot.lane.b32.xlu1 %v1373_v46, %s2657_s28 }
 0x1d9   : > { %1663 = vrot.lane.b32.xlu0 %v1372_v45, %s2658_s29 }
 0x1da   : > { %1563 = vrot.lane.b32.xlu1 %v1372_v45, %s2657_s28  ;;  %s251_s28 = scalar_lea.vmem %s3040_s6, %s2604_s19 }
 0x1dd   : > { %1767 = vrot.lane.b32.xlu0 %v2896_v24, %s2659_s30 }
 0x1de   : > { %1667 = vrot.lane.b32.xlu1 %v2896_v24, %s2658_s29 }
 0x1e1   : > { %1865 = vrot.lane.b32.xlu0 %v1373_v46, %s2660_s7 }
 0x1e2   : > { %1765 = vrot.lane.b32.xlu1 %v1373_v46, %s2659_s30 }
 0x1e5   : > { %1863 = vrot.lane.b32.xlu0 %v1372_v45, %s2660_s7 }
 0x1e6   : > { %1763 = vrot.lane.b32.xlu1 %v1372_v45, %s2659_s30 }
 0x1e9   : > { %1967 = vrot.lane.b32.xlu0 %v2896_v24, %s2661_s8 }
 0x1ea   : > { %1867 = vrot.lane.b32.xlu1 %v2896_v24, %s2660_s7 }
 0x1ed   : > { %2065 = vrot.lane.b32.xlu0 %v1373_v46, %s2662_s9 }
 0x1ee   : > { %1965 = vrot.lane.b32.xlu1 %v1373_v46, %s2661_s8 }
 0x1f1   : > { %2063 = vrot.lane.b32.xlu0 %v1372_v45, %s2662_s9 }
 0x1f2   : > { %1963 = vrot.lane.b32.xlu1 %v1372_v45, %s2661_s8 }
 0x1f5   : > { %2167 = vrot.lane.b32.xlu0 %v2896_v24, %s2663_s10 }
 0x1f6   : > { %2067 = vrot.lane.b32.xlu1 %v2896_v24, %s2662_s9 }
 0x1f9   : > { %2264 = vperm.xlu0 %2625, %v2261_v47  }
 0x1fa   : > { %2165 = vrot.lane.b32.xlu1 %v1373_v46, %s2663_s10 }
 0x1fe   : > { %2163 = vrot.lane.b32.xlu1 %v1372_v45, %s2663_s10 }
 0x23f   : > { %v1382_v48 = vpop.permute.xlu0 %1381 }
 0x240   : > { %v1384_v49 = vpop.permute.xlu1 %1383 }
 0x241   : > { %v1387_v54 = vsel %vm279_vm3, %v1382_v48, %v1384_v49 }
 0x243   : > { %v1568_v50 = vpop.permute.xlu0 %1567 }
 0x244   : > { %v1386_v51 = vpop.permute.xlu1 %1385 }
 0x245   : > { %2519 = vmatpush3.bf16.msra.mxu1 %v1386_v51  ;;  %v1388_v52 = vsel %vm279_vm3, %v1384_v49, %v1386_v51 }
 0x246   : > { %1396 = vmatprep.subr.bf16.mxu0 %v1388_v52  ;;  %2524 = vmatprep.subr.bf16.mxu1 %v2653_v0 }
 0x247   : > { %1397 = vmatpush1.bf16.msra.mxu0 %v1387_v54  ;;  %v1666_v56 = vpop.permute.xlu0 %1665 }
 0x248   : > { %2521 = vmatmul.mubr.msk.bf16.vlgmr.msra.gmra.mrb[36].mxu1 %vm1392_vm11, %v2399_v53  ;;  %1480 = vmatprep.subr.bf16.mxu0 %v1373_v46  ;;  %v1566_v55 = vpop.permute.xlu1 %1565 }
 0x249   : > { %2525 = vmatpush3.bf16.msra.mxu1 %v2896_v24  ;;  %2526 = vmatprep.mubr.msk.bf16.mxu1 %vm2654_vm0, %v2653_v0  ;;  %v1570_v57 = vsel %vm495_vm4, %v1566_v55, %v1568_v50 }
 0x24a   : > { %2400 = vmatmul.mubr.msk.bf16.vlgmr.msra.gmra.mrb[4].mxu0 %vm1392_vm11, %v2399_v53  ;;  %2530 = vmatprep.subr.bf16.mxu1 %v2653_v0 }
 0x24b   : > { %1481 = vmatpush1.bf16.msra.mxu0 %v1372_v45  ;;  %1512 = vmatprep.mubr.bf16.mxu0 %v2655_v1  ;;  %v1664_v60 = vpop.permute.xlu0 %1663 }
 0x24c   : > { %1577 = vmatprep.subr.bf16.mxu0 %v1570_v57  ;;  %v1564_v58 = vpop.permute.xlu1 %1563  ;;  %v1669_v6 = vsel %vm614_vm5, %v1664_v60, %v1666_v56 }
 0x24d   : > { %v1569_v63 = vsel %vm495_vm4, %v1564_v58, %v1566_v55 }
 0x24f   : > { %v1768_v4 = vpop.permute.xlu0 %1767 }
 0x250   : > { %2527 = vmatmul.mubr.msk.bf16.vlgmr.msra.gmra.mrb[40].mxu1 %vm1392_vm11, %v1375_v59  ;;  %v1668_v61 = vpop.permute.xlu1 %1667 }
 0x251   : > { %2531 = vmatpush3.bf16.msra.mxu1 %v1568_v50  ;;  %v1670_v62 = vsel %vm614_vm5, %v1666_v56, %v1668_v61  ;;  %2532 = vmatprep.mubr.msk.bf16.mxu1 %vm2654_vm0, %v2653_v0 }
 0x252   : > { %2402 = vmatmul.mubr.msk.bf16.vlgmr.msra.gmra.mrb[8].mxu0 %vm1392_vm11, %v1375_v59  ;;  %2536 = vmatprep.subr.bf16.mxu1 %v2653_v0 }
 0x253   : > { %1578 = vmatpush1.bf16.msra.mxu0 %v1569_v63  ;;  %1609 = vmatprep.mubr.bf16.mxu0 %v2655_v1  ;;  %v1866_v8 = vpop.permute.xlu0 %1865 }
 0x254   : > { %1677 = vmatprep.subr.bf16.mxu0 %v1670_v62  ;;  %v1766_v2 = vpop.permute.xlu1 %1765 }
 0x255   : > { %v1770_v7 = vsel %vm733_vm6, %v1766_v2, %v1768_v4 }
 0x257   : > { %v1864_v11 = vpop.permute.xlu0 %1863 }
 0x258   : > { %2533 = vmatmul.mubr.msk.bf16.vlgmr.msra.gmra.mrb[44].mxu1 %vm1392_vm11, %v2404_v3  ;;  %v1764_v5 = vpop.permute.xlu1 %1763  ;;  %v1869_v17 = vsel %vm852_vm8, %v1864_v11, %v1866_v8 }
 0x259   : > { %2537 = vmatpush3.bf16.msra.mxu1 %v1668_v61  ;;  %2538 = vmatprep.mubr.msk.bf16.mxu1 %vm2654_vm0, %v2653_v0  ;;  %v1769_v12 = vsel %vm733_vm6, %v1764_v5, %v1766_v2 }
 0x25a   : > { %2405 = vmatmul.mubr.msk.bf16.vlgmr.msra.gmra.mrb[12].mxu0 %vm1392_vm11, %v2404_v3  ;;  %2542 = vmatprep.subr.bf16.mxu1 %v2653_v0 }
 0x25b   : > { %1678 = vmatpush1.bf16.msra.mxu0 %v1669_v6  ;;  %1709 = vmatprep.mubr.bf16.mxu0 %v2655_v1  ;;  %v1968_v16 = vpop.permute.xlu0 %1967 }
 0x25c   : > { %1777 = vmatprep.subr.bf16.mxu0 %v1770_v7  ;;  %v1868_v10 = vpop.permute.xlu1 %1867 }
 0x25d   : > { %v1870_v13 = vsel %vm852_vm8, %v1866_v8, %v1868_v10 }
 0x25f   : > { %v2066_v21 = vpop.permute.xlu0 %2065 }
 0x260   : > { %2539 = vmatmul.mubr.msk.bf16.vlgmr.msra.gmra.mrb[48].mxu1 %vm1392_vm11, %v2407_v9  ;;  %v1966_v14 = vpop.permute.xlu1 %1965 }
 0x261   : > { %2543 = vmatpush3.bf16.msra.mxu1 %v1768_v4  ;;  %2544 = vmatprep.mubr.msk.bf16.mxu1 %vm2654_vm0, %v2653_v0  ;;  %v1970_v19 = vsel %vm975_vm7, %v1966_v14, %v1968_v16 }
 0x262   : > { %2408 = vmatmul.mubr.msk.bf16.vlgmr.msra.gmra.mrb[16].mxu0 %vm1392_vm11, %v2407_v9  ;;  %2548 = vmatprep.subr.bf16.mxu1 %v2653_v0 }
 0x263   : > { %1778 = vmatpush1.bf16.msra.mxu0 %v1769_v12  ;;  %1809 = vmatprep.mubr.bf16.mxu0 %v2655_v1  ;;  %v2064_v25 = vpop.permute.xlu0 %2063 }
 0x264   : > { %1877 = vmatprep.subr.bf16.mxu0 %v1870_v13  ;;  %v1964_v18 = vpop.permute.xlu1 %1963  ;;  %v2069_v28 = vsel %vm1097_vm9, %v2064_v25, %v2066_v21 }
 0x265   : > { %v1969_v23 = vsel %vm975_vm7, %v1964_v18, %v1966_v14 }
 0x267   : > { %v2168_v29 = vpop.permute.xlu0 %2167 }
 0x268   : > { %2545 = vmatmul.mubr.msk.bf16.vlgmr.msra.gmra.mrb[52].mxu1 %vm1392_vm11, %v2410_v15  ;;  %v2068_v22 = vpop.permute.xlu1 %2067 }
 0x269   : > { %2549 = vmatpush3.bf16.msra.mxu1 %v1868_v10  ;;  %2550 = vmatprep.mubr.msk.bf16.mxu1 %vm2654_vm0, %v2653_v0  ;;  %v2070_v24 = vsel %vm1097_vm9, %v2066_v21, %v2068_v22 }
 0x26a   : > { %2411 = vmatmul.mubr.msk.bf16.vlgmr.msra.gmra.mrb[20].mxu0 %vm1392_vm11, %v2410_v15  ;;  %2554 = vmatprep.subr.bf16.mxu1 %v2653_v0 }
 0x26b   : > { %1878 = vmatpush1.bf16.msra.mxu0 %v1869_v17  ;;  %1909 = vmatprep.mubr.bf16.mxu0 %v2655_v1 }
 0x26c   : > { %1977 = vmatprep.subr.bf16.mxu0 %v1970_v19  ;;  %v2166_v27 = vpop.permute.xlu1 %2165 }
 0x26d   : > { %v2170_v30 = vsel %vm1219_vm10, %v2166_v27, %v2168_v29 }
 0x270   : > { %2551 = vmatmul.mubr.msk.bf16.vlgmr.msra.gmra.mrb[56].mxu1 %vm1392_vm11, %v2413_v20  ;;  %v2164_v32 = vpop.permute.xlu1 %2163 }
 0x271   : > { %2555 = vmatpush3.bf16.msra.mxu1 %v1968_v16  ;;  %2556 = vmatprep.mubr.msk.bf16.mxu1 %vm2654_vm0, %v2653_v0  ;;  %v2169_v33 = vsel %vm1219_vm10, %v2164_v32, %v2166_v27 }
 0x272   : > { %2414 = vmatmul.mubr.msk.bf16.vlgmr.msra.gmra.mrb[24].mxu0 %vm1392_vm11, %v2413_v20  ;;  %2560 = vmatprep.subr.bf16.mxu1 %v2653_v0 }
 0x273   : > { %1978 = vmatpush1.bf16.msra.mxu0 %v1969_v23  ;;  %2009 = vmatprep.mubr.bf16.mxu0 %v2655_v1 }
 0x274   : > { %2077 = vmatprep.subr.bf16.mxu0 %v2070_v24 }
 0x278   : > { %2557 = vmatmul.mubr.msk.bf16.vlgmr.msra.gmra.mrb[60].mxu1 %vm1392_vm11, %v2416_v26 }
 0x279   : > { %2561 = vmatpush3.bf16.msra.mxu1 %v2068_v22  ;;  %2562 = vmatprep.mubr.msk.bf16.mxu1 %vm2654_vm0, %v2653_v0 }
 0x27a   : > { %2417 = vmatmul.mubr.msk.bf16.vlgmr.msra.gmra.mrb[28].mxu0 %vm1392_vm11, %v2416_v26  ;;  %2566 = vmatprep.subr.bf16.mxu1 %v2653_v0 }
 0x27b   : > { %2078 = vmatpush1.bf16.msra.mxu0 %v2069_v28  ;;  %2109 = vmatprep.mubr.bf16.mxu0 %v2655_v1 }
 0x27c   : > { %2177 = vmatprep.subr.bf16.mxu0 %v2170_v30 }
 0x280   : > { %2563 = vmatmul.mubr.msk.bf16.vlgmr.msra.gmra.mrb[64].mxu1 %vm1392_vm11, %v2419_v31 }
 0x281   : > { %2567 = vmatpush3.bf16.msra.mxu1 %v2168_v29  ;;  %2568 = vmatprep.mubr.msk.bf16.mxu1 %vm2654_vm0, %v2653_v0 }
 0x282   : > { %2420 = vmatmul.mubr.msk.bf16.vlgmr.msra.gmra.mrb[32].mxu0 %vm1392_vm11, %v2419_v31 }
 0x283   : > { %2178 = vmatpush1.bf16.msra.mxu0 %v2169_v33  ;;  %2209 = vmatprep.mubr.bf16.mxu0 %v2655_v1 }
 0x288   : > { %2569 = vmatmul.mubr.msk.bf16.vlgmr.msra.gmra.mrb[68].mxu1 %vm1392_vm11, %v2422_v34 }
 0x28a   : > { %2423 = vmatmul.mubr.msk.bf16.vlgmr.msra.gmra.mrb[36].mxu0 %vm1392_vm11, %v2422_v34 }
 0x31b   : > { %v1471_v35 = vpop.f32.mrb[36].mxu1 }
 0x31c   : > { %v2522_v36 = vpop.f32.mrb[37].mxu1 }
 0x31d   : > { %v1430_v37 = vpop.f32.mrb[4].mxu0  ;;  %v1474_v38 = vpop.f32.mrb[38].mxu1 }
 0x31e   : > { %v1432_v0 = vpop.f32.mrb[5].mxu0  ;;  %v2523_v39 = vpop.f32.mrb[39].mxu1 }
 0x31f   : > { %v1434_v40 = vpop.f32.mrb[6].mxu0 }
 0x320   : > { %v1435_v41 = vpop.f32.mrb[7].mxu0 }
 0x323   : > { %v1555_v42 = vpop.f32.mrb[40].mxu1 }
 0x324   : > { %v1556_v43 = vadd.f32 %v1555_v42, %v1471_v35  ;;  %v2528_v44 = vpop.f32.mrb[41].mxu1 }
 0x325   : > { %v1514_v1 = vpop.f32.mrb[8].mxu0  ;;  %v1558_v45 = vpop.f32.mrb[42].mxu1 }
 0x326   : > { %v1515_v46 = vadd.f32 %v1514_v1, %v1430_v37  ;;  %v1516_v47 = vpop.f32.mrb[9].mxu0  ;;  %v2529_v48 = vpop.f32.mrb[43].mxu1 }
 0x327   : > { %v1517_v49 = vadd.f32 %v1516_v47, %v1432_v0  ;;  %v1518_v50 = vpop.f32.mrb[10].mxu0 }
 0x328   : > { %v1519_v51 = vpop.f32.mrb[11].mxu0 }
 0x32b   : > { %v1652_v52 = vpop.f32.mrb[44].mxu1 }
 0x32c   : > { %v1660_v53 = vadd.f32 %v1652_v52, %v1556_v43  ;;  %v2534_v54 = vpop.f32.mrb[45].mxu1 }
 0x32d   : > { %v1611_v55 = vpop.f32.mrb[12].mxu0  ;;  %v1655_v56 = vpop.f32.mrb[46].mxu1 }
 0x32e   : > { %v1658_v57 = vadd.f32 %v1611_v55, %v1515_v46  ;;  %v1613_v58 = vpop.f32.mrb[13].mxu0  ;;  %v2535_v59 = vpop.f32.mrb[47].mxu1 }
 0x32f   : > { %v1659_v60 = vadd.f32 %v1613_v58, %v1517_v49  ;;  %v1615_v61 = vpop.f32.mrb[14].mxu0  ;;  %v2265_v55 = vpop.permute.xlu0 %2264 }
 0x330   : > { %v1616_v62 = vpop.f32.mrb[15].mxu0 }
 0x333   : > { %v1752_v63 = vpop.f32.mrb[48].mxu1 }
 0x334   : > { %v1760_v2 = vadd.f32 %v1752_v63, %v1660_v53  ;;  %v2540_v3 = vpop.f32.mrb[49].mxu1 }
 0x335   : > { %v1711_v4 = vpop.f32.mrb[16].mxu0  ;;  %v1755_v5 = vpop.f32.mrb[50].mxu1 }
 0x336   : > { %v1758_v6 = vadd.f32 %v1711_v4, %v1658_v57  ;;  %v1713_v7 = vpop.f32.mrb[17].mxu0  ;;  %v2541_v8 = vpop.f32.mrb[51].mxu1 }
 0x337   : > { %v1759_v9 = vadd.f32 %v1713_v7, %v1659_v60  ;;  %v1715_v10 = vpop.f32.mrb[18].mxu0 }
 0x338   : > { %v1716_v11 = vpop.f32.mrb[19].mxu0 }
 0x33b   : > { %v1852_v12 = vpop.f32.mrb[52].mxu1 }
 0x33c   : > { %v1860_v13 = vadd.f32 %v1852_v12, %v1760_v2  ;;  %v2546_v14 = vpop.f32.mrb[53].mxu1 }
 0x33d   : > { %v1811_v15 = vpop.f32.mrb[20].mxu0  ;;  %v1855_v16 = vpop.f32.mrb[54].mxu1 }
 0x33e   : > { %v1858_v17 = vadd.f32 %v1811_v15, %v1758_v6  ;;  %v1813_v18 = vpop.f32.mrb[21].mxu0  ;;  %v2547_v19 = vpop.f32.mrb[55].mxu1 }
 0x33f   : > { %v1859_v20 = vadd.f32 %v1813_v18, %v1759_v9  ;;  %v1815_v21 = vpop.f32.mrb[22].mxu0 }
 0x340   : > { %v1816_v22 = vpop.f32.mrb[23].mxu0 }
 0x343   : > { %v1952_v23 = vpop.f32.mrb[56].mxu1 }
 0x344   : > { %v1960_v24 = vadd.f32 %v1952_v23, %v1860_v13  ;;  %v2552_v25 = vpop.f32.mrb[57].mxu1 }
 0x345   : > { %v1911_v26 = vpop.f32.mrb[24].mxu0  ;;  %v1955_v27 = vpop.f32.mrb[58].mxu1 }
 0x346   : > { %v1958_v28 = vadd.f32 %v1911_v26, %v1858_v17  ;;  %v1913_v29 = vpop.f32.mrb[25].mxu0  ;;  %v2553_v30 = vpop.f32.mrb[59].mxu1 }
 0x347   : > { %v1959_v31 = vadd.f32 %v1913_v29, %v1859_v20  ;;  %v1915_v32 = vpop.f32.mrb[26].mxu0 }
 0x348   : > { %v1916_v33 = vpop.f32.mrb[27].mxu0 }
 0x34b   : > { %v2052_v34 = vpop.f32.mrb[60].mxu1 }
 0x34c   : > { %v2060_v35 = vadd.f32 %v2052_v34, %v1960_v24  ;;  %v2558_v36 = vpop.f32.mrb[61].mxu1 }
 0x34d   : > { %v2011_v37 = vpop.f32.mrb[28].mxu0  ;;  %v2055_v38 = vpop.f32.mrb[62].mxu1 }
 0x34e   : > { %v2058_v0 = vadd.f32 %v2011_v37, %v1958_v28  ;;  %v2013_v39 = vpop.f32.mrb[29].mxu0  ;;  %v2559_v40 = vpop.f32.mrb[63].mxu1 }
 0x34f   : > { %v2059_v41 = vadd.f32 %v2013_v39, %v1959_v31  ;;  %v2015_v42 = vpop.f32.mrb[30].mxu0 }
 0x350   : > { %v2016_v43 = vpop.f32.mrb[31].mxu0 }
 0x353   : > { %v2152_v44 = vpop.f32.mrb[64].mxu1 }
 0x354   : > { %v2160_v1 = vadd.f32 %v2152_v44, %v2060_v35  ;;  %v2564_v45 = vpop.f32.mrb[65].mxu1 }
 0x355   : > { %v2111_v46 = vpop.f32.mrb[32].mxu0  ;;  %v2155_v47 = vpop.f32.mrb[66].mxu1 }
 0x356   : > { %v2158_v48 = vadd.f32 %v2111_v46, %v2058_v0  ;;  %v2113_v49 = vpop.f32.mrb[33].mxu0  ;;  %v2565_v50 = vpop.f32.mrb[67].mxu1 }
 0x357   : > { %v2159_v51 = vadd.f32 %v2113_v49, %v2059_v41  ;;  %v2115_v52 = vpop.f32.mrb[34].mxu0 }
 0x358   : > { %v2116_v53 = vpop.f32.mrb[35].mxu0 }
 0x35b   : > { %v2252_v54 = vpop.f32.mrb[68].mxu1 }
 0x35c   : > { %v2260_v56 = vadd.f32 %v2252_v54, %v2160_v1  ;;  %v2570_v57 = vpop.f32.mrb[69].mxu1 }
 0x35d   : > { %v2211_v58 = vpop.f32.mrb[36].mxu0  ;;  %v2255_v59 = vpop.f32.mrb[70].mxu1 }
 0x35e   : > { %v2269_v60 = vadd.f32 %v2265_v55, %v2260_v56  ;;  %v2258_v61 = vadd.f32 %v2211_v58, %v2158_v48  ;;  %v2213_v62 = vpop.f32.mrb[37].mxu0  ;;  %v2571_v63 = vpop.f32.mrb[71].mxu1 }
 0x35f   : > { %v2259_v2 = vadd.f32 %v2213_v62, %v2159_v51  ;;  %v2215_v3 = vpop.f32.mrb[38].mxu0 }
 0x360   : > { %2639 = vtanh.f32 %v2269_v60  ;;  %v2267_v4 = vadd.f32 %v2265_v55, %v2258_v61  ;;  %v2216_v5 = vpop.f32.mrb[39].mxu0 }
 0x361   : > { %v2268_v6 = vadd.f32 %v2265_v55, %v2259_v2 }
 0x362   : > { %2641 = vtanh.f32 %v2267_v4 }
 0x363   : > { %2643 = vtanh.f32 %v2268_v6 }
 0x36a   : > { %v2640_v7 = vpop.eup %2639 }
 0x36b   : > { %2279 = vst.msk [vmem:[%s251_s28 + $0x8] sm:$0x7] %vm2278_vm12, %v2640_v7 }
 0x36c   : > { %v2642_v8 = vpop.eup %2641 }
 0x36d   : > { %v2644_v9 = vpop.eup %2643 }
 0x36e   : > { %v2275_v10 = vcombine.low %v2642_v8, %v2644_v9 }
 0x370   : > { %2277 = vst [vmem:[%s251_s28] sm:$0x77] %v2275_v10 }
 0x371 PF: > { %s16_s21 = sadd.s32 1, %s2651_s21  }
 0x372   : > { %p13_p4 = scmp.ge.s32.totalorder %s16_s21, 4  }
 0x374   :  { %15 = sbr.rel (!%p13_p4) target bundleno = 1 (0x1), region = 90 }

</bundles_post_ra>
